<compile_context>
chip_gen: v7x
topology: tpu7x:2x2x1
jax: 0.10.0
libtpu: 0.0.40
codegen_flags: <defaults>
</compile_context>

<pallas_src>
import functools

import numpy as np

import jax
import jax.numpy as jnp
from jax import lax
from jax.experimental import pallas as pl
from jax.experimental.pallas import tpu as pltpu


def _round_up(a, m):
    return ((a + m - 1) // m) * m


def _pick_rows(n_rows, lane_width, itemsize, target_bytes=2 << 20, align=16):
    """Row-block size: ~2 MiB lane-padded tile, >=2 grid steps when possible."""
    rb = max(align, (target_bytes // (lane_width * itemsize)) // align * align)
    if n_rows > align:
        # Keep at least 2 grid steps so "parallel" can shard rows across both
        # TensorCores on v7x (v5e/v6e have a single TC, the cap is harmless).
        rb = min(rb, _round_up(pl.cdiv(n_rows, 2), align))
    if rb >= n_rows:
        return n_rows            # single/full block; equals full dim -> always legal
    return rb                    # multiple of `align`, < n_rows


def _selection_matrices(d_s, n_g, ir_dim):
    """Trace-time 0/1 matrices folding output lane placement into the MXU.

    sel_x  : (D, D_out)      x @ sel_x        -> [scalars | gated]   (output order)
    sel_sig: (n_sig, D_out)  sigmoid @ sel_sig-> per-output-column multiplier
    """
    d_gated = n_g * ir_dim
    D = d_s + n_g + d_gated
    D_out = d_s + d_gated
    n_sig = d_s + n_g
    sx = np.zeros((D, D_out), np.float32)
    ss = np.zeros((n_sig, D_out), np.float32)
    for j in range(d_s):                       # scalar irreps: identity on both
        sx[j, j] = 1.0
        ss[j, j] = 1.0
    for g in range(n_g):                       # gated irreps
        for m in range(ir_dim):
            jo = d_s + g * ir_dim + m
            sx[d_s + n_g + g * ir_dim + m, jo] = 1.0   # take gated component
            ss[d_s + g, jo] = 1.0                      # broadcast its gate
    return jnp.asarray(sx), jnp.asarray(ss)


# ---------------------------------------------------------------------------
# Kernels
# ---------------------------------------------------------------------------
def _gate_kernel(x_ref, sx_ref, ss_ref, out_ref, *, n_sig):
    """One row tile of the gate.

    x_ref   : (rb, D)        [scalars | gates | gated]
    sx_ref  : (D, D_out)     0/1 selection of x columns into output order
    ss_ref  : (n_sig, D_out) 0/1 broadcast of sigmoid slab into output order
    out_ref : (rb, D_out)    [SiLU(scalars) | gated * sigmoid(gate)]
    """
    x = x_ref[...].astype(jnp.float32)
    # One EUP pass over the contiguous [scalars | gates] slab (lane-offset-0 slice).
    sig = jax.nn.sigmoid(x[:, :n_sig])

    hi = lax.Precision.HIGHEST
    # MXU 0/1-selection matmuls (exact; single nonzero per column). The MXU slot is
    # otherwise idle here, and this replaces XLU lane compaction + masked stores.
    x_sel = jnp.dot(x, sx_ref[...], precision=hi, preferred_element_type=jnp.float32)
    gates = jnp.dot(sig, ss_ref[...], precision=hi, preferred_element_type=jnp.float32)

    # Single full-width store of the output block.
    out_ref[...] = (x_sel * gates).astype(out_ref.dtype)


def _silu_kernel(x_ref, out_ref):
    x = x_ref[...].astype(jnp.float32)
    out_ref[...] = (x * jax.nn.sigmoid(x)).astype(out_ref.dtype)


# ---------------------------------------------------------------------------
# Paths
# ---------------------------------------------------------------------------
def _gate_path(x, d_s, n_g, ir_dim):
    N, D = x.shape
    d_gated = n_g * ir_dim
    D_out = d_s + d_gated
    n_sig = d_s + n_g
    itemsize = jnp.dtype(x.dtype).itemsize

    lane_w = max(_round_up(D, 128), _round_up(D_out, 128))
    rb = _pick_rows(N, lane_w, itemsize)
    grid = (pl.cdiv(N, rb),)

    sel_x, sel_sig = _selection_matrices(d_s, n_g, ir_dim)
    kernel = functools.partial(_gate_kernel, n_sig=n_sig)

    cost = pl.CostEstimate(
        flops=2 * N * D_out * (D + n_sig) + N * D_out,
        transcendentals=N * n_sig,
        bytes_accessed=(N * D + N * D_out) * itemsize,
    )

    return pl.pallas_call(
        kernel,
        out_shape=jax.ShapeDtypeStruct((N, D_out), x.dtype),
        grid=grid,
        in_specs=[
            pl.BlockSpec((rb, D), lambda i: (i, 0)),
            # Constant block index -> fetched once, not re-DMA'd per grid step.
            pl.BlockSpec((D, D_out), lambda i: (0, 0)),
            pl.BlockSpec((n_sig, D_out), lambda i: (0, 0)),
        ],
        out_specs=pl.BlockSpec((rb, D_out), lambda i: (i, 0)),
        compiler_params=pltpu.CompilerParams(dimension_semantics=("parallel",)),
        cost_estimate=cost,
    )(x, sel_x, sel_sig)


def _silu_path(x):
    """Plain SiLU, run on a lane-dense (M, 512) view (row-major reshape is free)."""
    N, D = x.shape
    itemsize = jnp.dtype(x.dtype).itemsize
    total = N * D
    W = 512
    padded = _round_up(total, W)
    flat = x.reshape(-1)
    if padded != total:
        flat = jnp.pad(flat, (0, padded - total))
    xd = flat.reshape(padded // W, W)
    M = xd.shape[0]

    rb = _pick_rows(M, W, itemsize)
    grid = (pl.cdiv(M, rb),)

    cost = pl.CostEstimate(
        flops=2 * total,
        transcendentals=total,
        bytes_accessed=2 * total * itemsize,
    )
    out = pl.pallas_call(
        _silu_kernel,
        out_shape=jax.ShapeDtypeStruct((M, W), x.dtype),
        grid=grid,
        in_specs=[pl.BlockSpec((rb, W), lambda i: (i, 0))],
        out_specs=pl.BlockSpec((rb, W), lambda i: (i, 0)),
        compiler_params=pltpu.CompilerParams(dimension_semantics=("parallel",)),
        cost_estimate=cost,
    )(xd)
    return out.reshape(-1)[:total].reshape(N, D)


# ---------------------------------------------------------------------------
# Wrapper (O3SwishGate.forward)
# ---------------------------------------------------------------------------
def o3_swish_gate(x, *, d_scalars, n_gates, ir_dim):
    """Pallas implementation of O3SwishGate.forward.

    x: [..., D] with D = d_scalars + n_gates + n_gates*ir_dim (gate path), or
       any D when n_gates*ir_dim == 0 (pure-SiLU fallback path).
    """
    d_gated = n_gates * ir_dim
    lead = x.shape[:-1]
    D = x.shape[-1]
    x2 = x.reshape(-1, D)

    if d_gated == 0:
        out = _silu_path(x2)
        return out.reshape(lead + (D,))

    assert D == d_scalars + n_gates + d_gated, "feature dim mismatch with irreps"
    D_out = d_scalars + d_gated
    out = _gate_path(x2, d_scalars, n_gates, ir_dim)
    return out.reshape(lead + (D_out,))


# ---------------------------------------------------------------------------
# Reference (pure JAX) for verification
# ---------------------------------------------------------------------------
def _ref_forward(x, d_scalars, n_gates, ir_dim):
    d_gated = n_gates * ir_dim
    if d_gated == 0:
        return x * jax.nn.sigmoid(x)
    s = x[:, :d_scalars]
    g = x[:, d_scalars:d_scalars + n_gates]
    z = x[:, d_scalars + n_gates:]
    s_act = s * jax.nn.sigmoid(s)
    gate = jax.nn.sigmoid(g)
    z_g = (z.reshape(x.shape[0], n_gates, ir_dim) * gate[:, :, None]).reshape(
        x.shape[0], d_gated)
    return jnp.concatenate([s_act, z_g], axis=-1)


if __name__ == "__main__":
    # Synthetic irreps: scalars = "8x0e", gates = "4x0e", gated = "4x1e" (ir_dim = 3).
    d_scalars, n_gates, ir_dim = 8, 4, 3
    D_in = d_scalars + n_gates + n_gates * ir_dim   # 24
    D_out = d_scalars + n_gates * ir_dim            # 20

    key = jax.random.PRNGKey(0)
    k1, k2, k3 = jax.random.split(key, 3)

    # Gate path, tile-aligned N (row grid has 2 steps -> exercises megacore path).
    N = 64
    x = jax.random.normal(k1, (N, D_in), dtype=jnp.float32)
    out = jax.block_until_ready(
        o3_swish_gate(x, d_scalars=d_scalars, n_gates=n_gates, ir_dim=ir_dim))
    ref = _ref_forward(x, d_scalars, n_gates, ir_dim)
    assert out.shape == (N, D_out)
    assert jnp.allclose(out, ref, atol=1e-5, rtol=1e-5)

    # Gate path, ragged N (exercises pl.cdiv grid + padded trailing block).
    N2 = 50
    x2 = jax.random.normal(k2, (N2, D_in), dtype=jnp.float32)
    out2 = jax.block_until_ready(
        o3_swish_gate(x2, d_scalars=d_scalars, n_gates=n_gates, ir_dim=ir_dim))
    assert jnp.allclose(out2, _ref_forward(x2, d_scalars, n_gates, ir_dim),
                        atol=1e-5, rtol=1e-5)

    # Degenerate path (no gated irreps -> plain SiLU, lane-dense reshape path).
    x3 = jax.random.normal(k3, (N, d_scalars), dtype=jnp.float32)
    out3 = jax.block_until_ready(
        o3_swish_gate(x3, d_scalars=d_scalars, n_gates=0, ir_dim=0))
    assert out3.shape == (N, d_scalars)
    assert jnp.allclose(out3, _ref_forward(x3, d_scalars, 0, 0),
                        atol=1e-5, rtol=1e-5)

    print("KERNEL_OK")
</pallas_src>

<mosaic_0001>
module attributes {stable_mosaic.version = 11 : i64} {
  func.func @_gate_kernel(%arg0: i32, %arg1: memref<32x24xf32, #tpu.memory_space<vmem>>, %arg2: memref<24x20xf32, #tpu.memory_space<vmem>>, %arg3: memref<12x20xf32, #tpu.memory_space<vmem>>, %arg4: memref<32x20xf32, #tpu.memory_space<vmem>>) attributes {dimension_semantics = [#tpu.dimension_semantics<parallel>], iteration_bounds = array<i64: 2>, scalar_prefetch = 0 : i64, scratch_operands = 0 : i64, tpu.core_type = #tpu.core_type<tc>, window_params = [{transform_indices = @transform_0, window_bounds = array<i64: 32, 24>}, {pipeline_mode = #tpu.pipeline_mode<synchronous>, transform_indices = @transform_1, window_bounds = array<i64: 24, 20>}, {pipeline_mode = #tpu.pipeline_mode<synchronous>, transform_indices = @transform_2, window_bounds = array<i64: 12, 20>}, {transform_indices = @transform_3, window_bounds = array<i64: 32, 20>}]} {
    %c0 = arith.constant 0 : index
    %c0_0 = arith.constant 0 : index
    %0 = vector.load %arg1[%c0, %c0_0] : memref<32x24xf32, #tpu.memory_space<vmem>>, vector<32x24xf32>
    %1 = vector.extract_strided_slice %0 {offsets = [0, 0], sizes = [32, 12], strides = [1, 1]} : vector<32x24xf32> to vector<32x12xf32>
    %2 = arith.negf %1 : vector<32x12xf32>
    %3 = math.exp %2 : vector<32x12xf32>
    %cst = arith.constant 1.000000e+00 : f32
    %4 = vector.broadcast %cst : f32 to vector<32x12xf32>
    %5 = arith.addf %4, %3 : vector<32x12xf32>
    %6 = arith.divf %4, %5 : vector<32x12xf32>
    %c0_1 = arith.constant 0 : index
    %c0_2 = arith.constant 0 : index
    %7 = vector.load %arg2[%c0_1, %c0_2] : memref<24x20xf32, #tpu.memory_space<vmem>>, vector<24x20xf32>
    %cst_3 = arith.constant dense<0.000000e+00> : vector<32x20xf32>
    %8 = tpu.matmul %0, %7, %cst_3 {dimension_numbers = #tpu.dot_dimension_numbers<[1], [0], [0], [1], [0, 0, 1, 1], [], []>, precision = #tpu.contract_precision<fp32>} : vector<32x24xf32>, vector<24x20xf32>, vector<32x20xf32> -> vector<32x20xf32>
    %c0_4 = arith.constant 0 : index
    %c0_5 = arith.constant 0 : index
    %9 = vector.load %arg3[%c0_4, %c0_5] : memref<12x20xf32, #tpu.memory_space<vmem>>, vector<12x20xf32>
    %cst_6 = arith.constant dense<0.000000e+00> : vector<32x20xf32>
    %10 = tpu.matmul %6, %9, %cst_6 {dimension_numbers = #tpu.dot_dimension_numbers<[1], [0], [0], [1], [0, 0, 1, 1], [], []>, precision = #tpu.contract_precision<fp32>} : vector<32x12xf32>, vector<12x20xf32>, vector<32x20xf32> -> vector<32x20xf32>
    %11 = arith.mulf %8, %10 : vector<32x20xf32>
    %c0_7 = arith.constant 0 : index
    %c0_8 = arith.constant 0 : index
    %12 = vector.load %arg4[%c0_7, %c0_8] : memref<32x20xf32, #tpu.memory_space<vmem>>, vector<32x20xf32>
    tpu.vector_store %arg4[%c0_7, %c0_8], %11 {strides = array<i32>} : memref<32x20xf32, #tpu.memory_space<vmem>>, vector<32x20xf32>,
    return
  }
  func.func @transform_0(%arg0: i32) -> (i32, i32) {
    %c0_i32 = arith.constant 0 : i32
    %c0_i32_0 = arith.constant 0 : i32
    return %arg0, %c0_i32 : i32, i32
  }
  func.func @transform_1(%arg0: i32) -> (i32, i32) {
    %c0_i32 = arith.constant 0 : i32
    %c0_i32_0 = arith.constant 0 : i32
    %c0_i32_1 = arith.constant 0 : i32
    return %c0_i32, %c0_i32_0 : i32, i32
  }
  func.func @transform_2(%arg0: i32) -> (i32, i32) {
    %c0_i32 = arith.constant 0 : i32
    %c0_i32_0 = arith.constant 0 : i32
    %c0_i32_1 = arith.constant 0 : i32
    return %c0_i32, %c0_i32_0 : i32, i32
  }
  func.func @transform_3(%arg0: i32) -> (i32, i32) {
    %c0_i32 = arith.constant 0 : i32
    %c0_i32_0 = arith.constant 0 : i32
    return %arg0, %c0_i32 : i32, i32
  }
}

</mosaic_0001>

<bundles_post_ra>
// kernel: tpu_custom_call.1
= control target key start
LH: loop header
LB: loop body
LE: loop exit
PB: predicated region body
PF: predicated region fallthrough
CT: control target
= control target key end

     0   :  { %s1856_s12 = smov 0   ;;  %s2068_s0 = inlined_call_operand.vmem [shape: f32[64,24], index: 0, kind: input, shape index: {}]   ;;  %s2069_s1 = inlined_call_operand.vmem [shape: f32[24,20], index: 1, kind: input, shape index: {}]   ;;  %s2070_s2 = inlined_call_operand.vmem [shape: f32[12,20], index: 2, kind: input, shape index: {}]   ;;  %s2071_s3 = inlined_call_operand.vmem [shape: f32[64,20], index: 3, kind: output, shape index: {}]  }
   0x1 LB: > { %s1491_s13 = sadd.s32 4294967295, %s1834_s12   ;;  %p1495_p0 = scmp.ge.s32.totalorder %s1834_s12, 1  ;;  %s1834_s12 = sphi %s1856_s12, %s13_s12  }
   0x2   : > { %p138_p1 = scmp.lt.s32.totalorder %s1834_s12, 3 }
   0x4   : > { %p139_p2 = pnand %p1495_p0, %p138_p1 }
   0x5   : > { %v202_v0 = vld [vmem:[%s2069_s1] sm:$0xff] (!%p139_p2)  ;;  %v203_v1 = vld [vmem:[%s2069_s1 + $0x8] sm:$0xff] (!%p139_p2)  ;;  %v204_v2 = vld [vmem:[%s2069_s1 + $0x10] sm:$0xff] (!%p139_p2)  ;;  %s1496_s20 = sshll.u32 (!%p139_p2), %s1491_s13, 2  ;;  %vm834_vm0 = vcmask (!%p139_p2), 1043456   ;;  %vm205_vm1 = vcmask (!%p139_p2), 195584  }
   0x6   : > { %142 = sbr.rel (%p139_p2) target bundleno = 315 (0x13b), region = 32  ;;  %v219_v3 = vand.u32 (!%p139_p2), 4294901760, %v202_v0  ;;  %v222_v4 = vand.u32 (!%p139_p2), 4294901760, %v203_v1  ;;  %v1873_v5 = vand.u32 (!%p139_p2), 4294901760, %v204_v2  ;;  %p163_p3 = scmp.lt.s32.totalorder (!%p139_p2), %s1496_s20, 7  ;;  %v819_v6 = vld [vmem:[%s2070_s2] sm:$0xff] (!%p139_p2) }
   0x7   : > { %v820_v7 = vld [vmem:[%s2070_s2 + $0x8] sm:$0xf] (!%p139_p2)  ;;  %v839_v8 = vand.u32 (!%p139_p2), 4294901760, %v819_v6  ;;  %vm821_vm2 = vcmask (!%p139_p2), 97280   ;;  %vm1430_vm3 = vcmask (!%p139_p2), 162816  }
   0x8   : > { %v1881_v9 = vpack.c.bf16 (!%p139_p2), %v222_v4, %v219_v3  ;;  %v1885_v10 = vsub.f32 (!%p139_p2), %v202_v0, %v219_v3  ;;  %v1887_v11 = vsub.f32 (!%p139_p2), %v203_v1, %v222_v4  ;;  %v1890_v12 = vsub.f32 (!%p139_p2), %v204_v2, %v1873_v5 }
   0x9   : > { %v836_v13 = vsel (!%p139_p2), %vm834_vm0, %v820_v7, 0  ;;  %v1892_v14 = vsub.f32 (!%p139_p2), %v819_v6, %v839_v8 }
   0xa   : > { %1717 = vmatprep.subr.bf16.mxu0 (!%p139_p2), %v1881_v9  ;;  %v329_v15 = vand.u32 (!%p139_p2), 4294901760, %v1885_v10  ;;  %v336_v16 = vand.u32 (!%p139_p2), 4294901760, %v1887_v11  ;;  %v1905_v17 = vand.u32 (!%p139_p2), 4294901760, %v1890_v12  ;;  %v842_v23 = vand.u32 (!%p139_p2), 4294901760, %v836_v13 }
   0xb   : > { %1719 = vmatpush3.bf16.msra.mxu0 (!%p139_p2), %v1881_v9  ;;  %v948_v24 = vand.u32 (!%p139_p2), 4294901760, %v1892_v14 }
   0xc   : > { %1588 = vmatprep.subr.mxu0 (!%p139_p2), %v1873_v5  ;;  %v330_v20 = vsub.f32 (!%p139_p2), %v1885_v10, %v329_v15  ;;  %v337_v21 = vsub.f32 (!%p139_p2), %v1887_v11, %v336_v16  ;;  %v344_v42 = vsub.f32 (!%p139_p2), %v1890_v12, %v1905_v17  ;;  %v1941_v47 = vpack.c.bf16 (!%p139_p2), %v842_v23, %v839_v8 }
   0xd   : > { %s2073_s20 = smov (!%p163_p3, %s1496_s20), 7  ;;  %v949_v48 = vsub.f32 %v1892_v14, %v948_v24  ;;  %v1946_v49 = vsub.f32 %v836_v13, %v842_v23  ;;  %v1724_v8 = vpack.c.bf16 %v1887_v11, %v1885_v10 }
   0xe   : > { %s1497_s25 = sshll.u32 %s2073_s20, 3  ;;  %v331_v31 = vand.u32 4294901760, %v330_v20  ;;  %v338_v32 = vand.u32 4294901760, %v337_v21  ;;  %1741 = vmatprep.subr.bf16.mxu1 %v1941_v47  ;;  %v345_v59 = vand.u32 4294901760, %v344_v42 }
   0xf   : > { %s166_s28 = scalar_lea.vmem %s2068_s0, %s1497_s25  ;;  %1589 = vmatpush3.msra.mxu0 %v1873_v5  ;;  %v955_v54 = vand.u32 4294901760, %v1946_v49  ;;  %1743 = vmatpush3.bf16.msra.mxu1 %v1941_v47  ;;  %v950_v60 = vand.u32 4294901760, %v949_v48  ;;  %s172_s4 = scalar_lea.vmem %s2071_s3, %s1497_s25 }
  0x10   : > { %v174_v18 = vld [vmem:[%s166_s28] sm:$0xff]  ;;  %v175_v19 = vld [vmem:[%s166_s28 + $0x8] sm:$0xff]  ;;  %v176_v22 = vld [vmem:[%s166_s28 + $0x10] sm:$0xff]  ;;  %v1720_v39 = vpack.c.bf16 %v338_v32, %v331_v31 }
  0x11   : > { %v1500_v25 = vmul.f32 -1.442695, %v174_v18  ;;  %v207_v26 = vsel %vm205_vm1, %v174_v18, 0  ;;  %v1501_v27 = vmul.f32 -1.442695, %v175_v19  ;;  %v210_v28 = vsel %vm205_vm1, %v175_v19, 0 }
  0x12   : > { %v1917_v29 = vand.u32 4294901760, %v207_v26  ;;  %v1919_v30 = vand.u32 4294901760, %v210_v28  ;;  %v177_v33 = vld [vmem:[%s166_s28 + $0x18] sm:$0xff]  ;;  %v1502_v34 = vmul.f32 -1.442695, %v176_v22  ;;  %v213_v35 = vsel %vm205_vm1, %v176_v22, 0  ;;  %1721 = vmatprep.subr.bf16.mxu0 %v1720_v39 }
  0x13   : > { %1812 = vpow2.f32 %v1500_v25  ;;  %v1503_v36 = vmul.f32 -1.442695, %v177_v33  ;;  %v1929_v40 = vand.u32 4294901760, %v213_v35  ;;  %v216_v41 = vsel %vm205_vm1, %v177_v33, 0 }
  0x14   : > { %v1924_v37 = vsub.f32 %v207_v26, %v1917_v29  ;;  %1814 = vpow2.f32 %v1501_v27  ;;  %v1927_v38 = vsub.f32 %v210_v28, %v1919_v30  ;;  %v1936_v45 = vand.u32 4294901760, %v216_v41 }
  0x15   : > { %1816 = vpow2.f32 %v1502_v34  ;;  %v1939_v46 = vsub.f32 %v213_v35, %v1929_v40  ;;  %v956_v61 = vsub.f32 %v1946_v49, %v955_v54  ;;  %v1732_v35 = vpack.c.bf16 %v336_v16, %v329_v15 }
  0x16   : > { %v288_v43 = vand.u32 4294901760, %v1924_v37  ;;  %v298_v44 = vand.u32 4294901760, %v1927_v38  ;;  %1818 = vpow2.f32 %v1503_v36  ;;  %v1955_v52 = vsub.f32 %v216_v41, %v1936_v45 }
  0x17   : > { %v308_v53 = vand.u32 4294901760, %v1939_v46  ;;  %v957_v1 = vand.u32 4294901760, %v956_v61 }
  0x18   : > { %v289_v50 = vsub.f32 %v1924_v37, %v288_v43  ;;  %v299_v51 = vsub.f32 %v1927_v38, %v298_v44  ;;  %v318_v57 = vand.u32 4294901760, %v1955_v52 }
  0x19   : > { %v309_v58 = vsub.f32 %v1939_v46, %v308_v53  ;;  %v1973_v13 = vpack.c.bf16 %v957_v1, %v950_v60 }
  0x1a   : > { %v290_v55 = vand.u32 4294901760, %v289_v50  ;;  %v300_v56 = vand.u32 4294901760, %v299_v51  ;;  %v319_v62 = vsub.f32 %v1955_v52, %v318_v57 }
  0x1b   : > { %v310_v0 = vand.u32 4294901760, %v309_v58  ;;  %1745 = vmatprep.subr.bf16.mxu1 %v1973_v13 }
  0x1c   : > { %1590 = vmatprep.mubr.f32.mxu0 %v290_v55  ;;  %v320_v4 = vand.u32 4294901760, %v319_v62 }
  0x1d   : > { %v1813_v63 = vpop.eup %1812  ;;  %1591 = vmatmul.mubr.f32.vlgmr.msra.gmra.mrb[0].mxu0 %v300_v56 }
  0x1e   : > { %v1815_v2 = vpop.eup %1814  ;;  %v190_v3 = vadd.f32 1.0, %v1813_v63  ;;  %1723 = vmatpush3.bf16.msra.mxu0 %v1720_v39  ;;  %1593 = vmatprep.mubr.f32.mxu0 %v310_v0 }
  0x1f   : > { %v1817_v6 = vpop.eup %1816  ;;  %v191_v7 = vadd.f32 1.0, %v1815_v2  ;;  %1600 = vmatprep.subr.mxu0 %v345_v59 }
  0x20   : > { %v1819_v18 = vpop.eup %1818  ;;  %1820 = vrcp.f32 %v190_v3  ;;  %v192_v19 = vadd.f32 1.0, %v1817_v6 }
  0x21   : > { %1822 = vrcp.f32 %v191_v7  ;;  %v193_v20 = vadd.f32 1.0, %v1819_v18  ;;  %1594 = vmatmul.mubr.f32.gmra.mrb[2].mxu0 %v320_v4 }
  0x22   : > { %1824 = vrcp.f32 %v192_v19  ;;  %1601 = vmatpush3.msra.mxu0 %v345_v59  ;;  %1602 = vmatprep.mubr.f32.mxu0 %v1917_v29 }
  0x23   : > { %1826 = vrcp.f32 %v193_v20  ;;  %1725 = vmatprep.subr.bf16.mxu0 %v1724_v8 }
  0x25   : > { %1603 = vmatmul.mubr.f32.vlgmr.msra.gmra.mrb[0].mxu0 %v1919_v30 }
  0x26   : > { %1605 = vmatprep.mubr.f32.mxu0 %v1929_v40  ;;  %1727 = vmatpush3.bf16.msra.mxu0 %v1724_v8 }
  0x27   : > { %1612 = vmatprep.subr.mxu0 %v1890_v12 }
  0x29   : > { %1606 = vmatmul.mubr.f32.gmra.mrb[2].mxu0 %v1936_v45 }
  0x2a   : > { %v1821_v21 = vpop.eup %1820  ;;  %1613 = vmatpush3.msra.mxu0 %v1890_v12  ;;  %1614 = vmatprep.mubr.f32.mxu0 %v1924_v37  ;;  %v1748_v37 = vpack.c.bf16 %v1946_v49, %v1892_v14 }
  0x2b   : > { %v1823_v22 = vpop.eup %1822  ;;  %1729 = vmatprep.subr.bf16.mxu0 %v1881_v9  ;;  %v823_v23 = vsel %vm821_vm2, %v1821_v21, 0 }
  0x2c   : > { %v1825_v25 = vpop.eup %1824  ;;  %v1985_v26 = vand.u32 4294901760, %v823_v23  ;;  %v826_v27 = vsel %vm821_vm2, %v1823_v22, 0 }
  0x2d   : > { %v1827_v28 = vpop.eup %1826  ;;  %1615 = vmatmul.mubr.f32.vlgmr.msra.gmra.mrb[0].mxu0 %v1927_v38  ;;  %v1989_v31 = vand.u32 4294901760, %v826_v27  ;;  %v829_v32 = vsel %vm821_vm2, %v1825_v25, 0 }
  0x2e   : > { %1617 = vmatprep.mubr.f32.mxu0 %v1939_v46  ;;  %1731 = vmatpush3.bf16.msra.mxu0 %v1881_v9  ;;  %v1995_v12 = vsub.f32 %v823_v23, %v1985_v26  ;;  %v1997_v33 = vand.u32 4294901760, %v829_v32  ;;  %v832_v34 = vsel %vm821_vm2, %v1827_v28, 0 }
  0x2f   : > { %1624 = vmatprep.subr.mxu0 %v1873_v5  ;;  %v916_v36 = vsub.f32 %v826_v27, %v1989_v31  ;;  %v2006_v39 = vand.u32 4294901760, %v832_v34 }
  0x30   : > { %v907_v41 = vand.u32 4294901760, %v1995_v12  ;;  %v926_v42 = vsub.f32 %v829_v32, %v1997_v33 }
  0x31   : > { %1618 = vmatmul.mubr.f32.gmra.mrb[2].mxu0 %v1955_v52  ;;  %v917_v48 = vand.u32 4294901760, %v916_v36  ;;  %v936_v50 = vsub.f32 %v832_v34, %v2006_v39 }
  0x32   : > { %1625 = vmatpush3.msra.mxu0 %v1873_v5  ;;  %1626 = vmatprep.mubr.f32.mxu0 %v288_v43  ;;  %v908_v10 = vsub.f32 %v1995_v12, %v907_v41  ;;  %v927_v11 = vand.u32 4294901760, %v926_v42 }
  0x33   : > { %1733 = vmatprep.subr.bf16.mxu0 %v1732_v35  ;;  %v918_v15 = vsub.f32 %v916_v36, %v917_v48  ;;  %v937_v16 = vand.u32 4294901760, %v936_v50 }
  0x34   : > { %v909_v51 = vand.u32 4294901760, %v908_v10  ;;  %v928_v55 = vsub.f32 %v926_v42, %v927_v11 }
  0x35   : > { %1627 = vmatmul.mubr.f32.vlgmr.msra.gmra.mrb[0].mxu0 %v298_v44  ;;  %v919_v56 = vand.u32 4294901760, %v918_v15  ;;  %v938_v58 = vsub.f32 %v936_v50, %v937_v16 }
  0x36   : > { %1660 = vmatprep.mubr.f32.mxu1 %v909_v51  ;;  %1629 = vmatprep.mubr.f32.mxu0 %v308_v53  ;;  %v929_v59 = vand.u32 4294901760, %v928_v55 }
  0x37   : > { %1661 = vmatmul.mubr.f32.vlgmr.msra.gmra.mrb[0].mxu1 %v919_v56  ;;  %1735 = vmatpush3.bf16.msra.mxu0 %v1732_v35  ;;  %v939_v43 = vand.u32 4294901760, %v938_v58 }
  0x38   : > { %1747 = vmatpush3.bf16.msra.mxu1 %v1973_v13  ;;  %1663 = vmatprep.mubr.f32.mxu1 %v929_v59 }
  0x39   : > { %1630 = vmatmul.mubr.f32.gmra.mrb[2].mxu0 %v318_v57  ;;  %1636 = vmatprep.subr.mxu0 %v1905_v17 }
  0x3a   : > { %1638 = vmatprep.mubr.f32.mxu0 %v1917_v29  ;;  %1749 = vmatprep.subr.bf16.mxu1 %v1748_v37 }
  0x3b   : > { %1664 = vmatmul.mubr.f32.gmra.mrb[2].mxu1 %v939_v43  ;;  %1637 = vmatpush3.msra.mxu0 %v1905_v17 }
  0x3c   : > { %1670 = vmatprep.mubr.f32.mxu1 %v1985_v26  ;;  %1737 = vmatprep.subr.bf16.mxu0 %v1881_v9 }
  0x3d   : > { %1639 = vmatmul.mubr.f32.vlgmr.msra.gmra.mrb[0].mxu0 %v1919_v30 }
  0x3e   : > { %1641 = vmatprep.mubr.f32.mxu0 %v1929_v40  ;;  %1739 = vmatpush3.bf16.msra.mxu0 %v1881_v9  ;;  %v1756_v9 = vpack.c.bf16 %v955_v54, %v948_v24 }
  0x3f   : > { %1671 = vmatmul.mubr.f32.vlgmr.msra.gmra.mrb[0].mxu1 %v1989_v31  ;;  %1648 = vmatprep.subr.mxu0 %v1873_v5 }
  0x40   : > { %1751 = vmatpush3.bf16.msra.mxu1 %v1748_v37  ;;  %1673 = vmatprep.mubr.f32.mxu1 %v1997_v33 }
  0x41   : > { %1642 = vmatmul.mubr.f32.gmra.mrb[2].mxu0 %v1936_v45  ;;  %1753 = vmatprep.subr.bf16.mxu1 %v1941_v47 }
  0x42   : > { %1649 = vmatpush3.msra.mxu0 %v1873_v5  ;;  %1650 = vmatprep.mubr.f32.mxu0 %v1917_v29 }
  0x43   : > { %1674 = vmatmul.mubr.f32.gmra.mrb[2].mxu1 %v2006_v39 }
  0x44   : > { %1680 = vmatprep.mubr.f32.mxu1 %v1995_v12 }
  0x45   : > { %1651 = vmatmul.mubr.f32.vlgmr.msra.gmra.mrb[0].mxu0 %v1919_v30 }
  0x46   : > { %1653 = vmatprep.mubr.f32.mxu0 %v1929_v40 }
  0x47   : > { %1681 = vmatmul.mubr.f32.vlgmr.msra.gmra.mrb[0].mxu1 %v916_v36 }
  0x48   : > { %1755 = vmatpush3.bf16.msra.mxu1 %v1941_v47  ;;  %1683 = vmatprep.mubr.f32.mxu1 %v926_v42 }
  0x49   : > { %1654 = vmatmul.mubr.f32.gmra.mrb[2].mxu0 %v1936_v45  ;;  %1757 = vmatprep.subr.bf16.mxu1 %v1756_v9 }
  0x4b   : > { %1684 = vmatmul.mubr.f32.gmra.mrb[2].mxu1 %v936_v50 }
  0x4c   : > { %1690 = vmatprep.mubr.f32.mxu1 %v907_v41 }
  0x4f   : > { %1691 = vmatmul.mubr.f32.vlgmr.msra.gmra.mrb[0].mxu1 %v917_v48 }
  0x50   : > { %1759 = vmatpush3.bf16.msra.mxu1 %v1756_v9  ;;  %1693 = vmatprep.mubr.f32.mxu1 %v927_v11 }
  0x51   : > { %1761 = vmatprep.subr.bf16.mxu1 %v1941_v47 }
  0x53   : > { %1694 = vmatmul.mubr.f32.gmra.mrb[2].mxu1 %v937_v16 }
  0x54   : > { %1700 = vmatprep.mubr.f32.mxu1 %v1985_v26 }
  0x57   : > { %1701 = vmatmul.mubr.f32.vlgmr.msra.gmra.mrb[0].mxu1 %v1989_v31 }
  0x58   : > { %1763 = vmatpush3.bf16.msra.mxu1 %v1941_v47  ;;  %1703 = vmatprep.mubr.f32.mxu1 %v1997_v33 }
  0x5b   : > { %1704 = vmatmul.mubr.f32.gmra.mrb[2].mxu1 %v2006_v39 }
  0x5c   : > { %1710 = vmatprep.mubr.f32.mxu1 %v1985_v26 }
  0x5f   : > { %1711 = vmatmul.mubr.f32.vlgmr.msra.gmra.mrb[0].mxu1 %v1989_v31 }
  0x60   : > { %1713 = vmatprep.mubr.f32.mxu1 %v1997_v33 }
  0x63   : > { %1714 = vmatmul.mubr.f32.gmra.mrb[2].mxu1 %v2006_v39 }
 0x118   : > { %v1652_v5 = vpop.f32.mrb[0].mxu0 }
 0x119   : > { %v797_v14 = vpop.f32.mrb[1].mxu0 }
 0x11c   : > { %v1655_v17 = vpop.f32.mrb[2].mxu0 }
 0x11d   : > { %v809_v24 = vpop.f32.mrb[3].mxu0 }
 0x132   : > { %v1712_v29 = vpop.f32.mrb[0].mxu1 }
 0x133   : > { %v1427_v30 = vmul.f32 %v1712_v29, %v1652_v5  ;;  %v1404_v38 = vpop.f32.mrb[1].mxu1 }
 0x134   : > { %v1426_v40 = vmul.f32 %v1404_v38, %v797_v14 }
 0x135   : > { %1432 = vst.msk [vmem:[%s172_s4 + $0x8] sm:$0xff] %vm1430_vm3, %v1427_v30 }
 0x136   : > { %1431 = vst.msk [vmem:[%s172_s4] sm:$0xff] %vm1430_vm3, %v1426_v40  ;;  %v1715_v44 = vpop.f32.mrb[2].mxu1 }
 0x137   : > { %v1429_v45 = vmul.f32 %v1715_v44, %v1655_v17  ;;  %v1416_v46 = vpop.f32.mrb[3].mxu1 }
 0x138   : > { %v1428_v47 = vmul.f32 %v1416_v46, %v809_v24 }
 0x139   : > { %1434 = vst.msk [vmem:[%s172_s4 + $0x18] sm:$0xff] %vm1430_vm3, %v1429_v45 }
 0x13a   : > { %1433 = vst.msk [vmem:[%s172_s4 + $0x10] sm:$0xff] %vm1430_vm3, %v1428_v47 }
 0x13b PF: > { %s13_s12 = sadd.s32 1, %s1834_s12  }
 0x13c   : > { %p10_p4 = scmp.ge.s32.totalorder %s13_s12, 4  }
 0x13e   :  { %12 = sbr.rel (!%p10_p4) target bundleno = 1 (0x1), region = 62 }

</bundles_post_ra>
